<compile_context>
chip_gen: v7x
topology: tpu7x:2x2x1
jax: 0.10.0
libtpu: 0.0.40
codegen_flags: <defaults>
</compile_context>

<pallas_src>
import functools

import jax
import jax.numpy as jnp
import numpy as np
from jax import lax
from jax.experimental import pallas as pl
from jax.experimental.pallas import tpu as pltpu


# ------------------------- tiling configuration ---------------------------

# 48 MiB scoped-VMEM budget: above the 16/32 MiB defaults (so big tiles still
# pipeline on v5e/v6e) and below physical VMEM on every generation (64 MiB on
# v7x, 128 MiB on v5e/v6e).
_VMEM_LIMIT = 48 * 1024 * 1024
_TM = 512          # rows (pixels) per M tile for the 1x1-conv matmuls
_TK = 512          # reduction tile for the 1x1-conv matmuls


def _m_tile(m):
    # Full block when small (always legal); otherwise 512 (multiple of 8),
    # Pallas handles the partial trailing block.
    return m if m <= _TM else _TM


def _k_tile(k):
    # Only tile K when it divides evenly so every K block is exact for the
    # accumulation; ResNet channel counts are powers of two so this hits.
    return _TK if (k > _TK and k % _TK == 0) else k


# ----------------------------- Pallas kernels ------------------------------

def _mm_bias_kernel(x_ref, w_ref, b_ref, o_ref, acc_ref, *, relu):
    """out = x @ w + bias [+ ReLU], accumulated over the K grid axis."""
    k = pl.program_id(1)

    @pl.when(k == 0)
    def _init():
        acc_ref[...] = jnp.zeros_like(acc_ref)

    acc_ref[...] += jnp.dot(x_ref[...], w_ref[...],
                            preferred_element_type=jnp.float32)

    @pl.when(k == pl.num_programs(1) - 1)
    def _finalize():
        y = acc_ref[...] + b_ref[...]
        if relu:
            y = jnp.maximum(y, 0.0)
        o_ref[...] = y.astype(o_ref.dtype)


def matmul_bias(x, w, b, *, relu, out_dtype=jnp.bfloat16):
    """(M,K)@(K,N) + bias [+ReLU]; M-tiled ("parallel") + K-tiled ("arbitrary")."""
    m, k = x.shape
    n = w.shape[1]
    tm, tk = _m_tile(m), _k_tile(k)
    grid = (pl.cdiv(m, tm), k // tk)
    return pl.pallas_call(
        functools.partial(_mm_bias_kernel, relu=relu),
        out_shape=jax.ShapeDtypeStruct((m, n), out_dtype),
        grid_spec=pltpu.PrefetchScalarGridSpec(
            num_scalar_prefetch=0,
            grid=grid,
            in_specs=[
                pl.BlockSpec((tm, tk), lambda i, kk: (i, kk)),
                pl.BlockSpec((tk, n), lambda i, kk: (kk, 0)),
                pl.BlockSpec((1, n), lambda i, kk: (0, 0)),
            ],
            out_specs=pl.BlockSpec((tm, n), lambda i, kk: (i, 0)),
            scratch_shapes=[pltpu.VMEM((tm, n), jnp.float32)],
        ),
        compiler_params=pltpu.CompilerParams(
            dimension_semantics=("parallel", "arbitrary"),
            vmem_limit_bytes=_VMEM_LIMIT),
    )(x, w, b)


def _mm2_bias_relu_kernel(h_ref, w3_ref, x_ref, ws_ref, b_ref, o_ref):
    """out = relu(h @ w3 + x @ ws + bias)   (conv3 + projection shortcut)."""
    acc = jnp.dot(h_ref[...], w3_ref[...], preferred_element_type=jnp.float32)
    acc += jnp.dot(x_ref[...], ws_ref[...], preferred_element_type=jnp.float32)
    o_ref[...] = jnp.maximum(acc + b_ref[...], 0.0).astype(o_ref.dtype)


def conv3_projection_fused(h, w3, x_sc, ws, b, out_dtype=jnp.bfloat16):
    m, k3 = h.shape
    n = w3.shape[1]
    ks = ws.shape[0]
    tm = _m_tile(m)
    return pl.pallas_call(
        _mm2_bias_relu_kernel,
        out_shape=jax.ShapeDtypeStruct((m, n), out_dtype),
        grid_spec=pltpu.PrefetchScalarGridSpec(
            num_scalar_prefetch=0,
            grid=(pl.cdiv(m, tm),),
            in_specs=[
                pl.BlockSpec((tm, k3), lambda i: (i, 0)),
                pl.BlockSpec((k3, n), lambda i: (0, 0)),
                pl.BlockSpec((tm, ks), lambda i: (i, 0)),
                pl.BlockSpec((ks, n), lambda i: (0, 0)),
                pl.BlockSpec((1, n), lambda i: (0, 0)),
            ],
            out_specs=pl.BlockSpec((tm, n), lambda i: (i, 0)),
        ),
        compiler_params=pltpu.CompilerParams(
            dimension_semantics=("parallel",),
            vmem_limit_bytes=_VMEM_LIMIT),
    )(h, w3, x_sc, ws, b)


def _mm_bias_add_relu_kernel(h_ref, w3_ref, b_ref, r_ref, o_ref):
    """out = relu(h @ w3 + bias + residual)   (conv3 + identity shortcut)."""
    acc = jnp.dot(h_ref[...], w3_ref[...], preferred_element_type=jnp.float32)
    acc += b_ref[...] + r_ref[...].astype(jnp.float32)
    o_ref[...] = jnp.maximum(acc, 0.0).astype(o_ref.dtype)


def conv3_identity_fused(h, w3, b, residual, out_dtype=jnp.bfloat16):
    m, k3 = h.shape
    n = w3.shape[1]
    tm = _m_tile(m)
    return pl.pallas_call(
        _mm_bias_add_relu_kernel,
        out_shape=jax.ShapeDtypeStruct((m, n), out_dtype),
        grid_spec=pltpu.PrefetchScalarGridSpec(
            num_scalar_prefetch=0,
            grid=(pl.cdiv(m, tm),),
            in_specs=[
                pl.BlockSpec((tm, k3), lambda i: (i, 0)),
                pl.BlockSpec((k3, n), lambda i: (0, 0)),
                pl.BlockSpec((1, n), lambda i: (0, 0)),
                pl.BlockSpec((tm, n), lambda i: (i, 0)),
            ],
            out_specs=pl.BlockSpec((tm, n), lambda i: (i, 0)),
        ),
        compiler_params=pltpu.CompilerParams(
            dimension_semantics=("parallel",),
            vmem_limit_bytes=_VMEM_LIMIT),
    )(h, w3, b, residual)


def _conv3x3_bn_relu_kernel(*args, n_views, wo, tap_view, tap_col):
    """One output row of a 3x3/pad=1 conv as 9 accumulated matmuls.

    args = [3*n_views row refs (1,1,Wv,C)] + [w_ref (3,3,C,Cout),
            b_ref (1,Cout), o_ref (1,1,Wo,Cout)]
    """
    row_refs = args[:3 * n_views]
    w_ref, b_ref, o_ref = args[3 * n_views:]
    cout = o_ref.shape[-1]
    acc = jnp.zeros((wo, cout), jnp.float32)
    for kh in range(3):
        for kw in range(3):
            row = row_refs[kh * n_views + tap_view[kw]][0, 0]      # (Wv, C)
            c0 = tap_col[kw]
            win = row[c0:c0 + wo, :]                               # (Wo, C)
            acc = acc + jnp.dot(win, w_ref[kh, kw],
                                preferred_element_type=jnp.float32)
    o_ref[0, 0] = jnp.maximum(acc + b_ref[...], 0.0).astype(o_ref.dtype)


def conv3x3_bn_relu(x, w_hwio, b, stride, out_dtype=jnp.bfloat16):
    """3x3 conv (pad=1, given stride) + folded-BN bias + ReLU, no im2col.

    x: (N,H,W,C) bf16; w_hwio: (3,3,C,Cout) bf16 (BN scale folded in);
    b: (1,Cout) f32.  Grid = (N, Ho); each step reads the three padded input
    rows it needs (size-1 H blocks with index_map row = stride*i + kh).
    W-stride is handled by phase views built once in glue (stride==1: none).
    """
    n, hgt, wid, c = x.shape
    cout = w_hwio.shape[-1]
    s = stride
    ho = (hgt + 2 - 3) // s + 1
    wo = (wid + 2 - 3) // s + 1

    xp = jnp.pad(x, ((0, 0), (1, 1), (1, 1), (0, 0)))
    phases = sorted({kw % s for kw in range(3)})
    views = [xp if s == 1 else xp[:, :, p::s, :] for p in phases]
    tap_view = tuple(phases.index(kw % s) for kw in range(3))
    tap_col = tuple(kw // s for kw in range(3))
    n_views = len(views)

    in_specs = []
    inputs = []
    for kh in range(3):
        for v in range(n_views):
            wv = views[v].shape[2]
            in_specs.append(pl.BlockSpec(
                (1, 1, wv, c),
                lambda bi, ri, kh=kh: (bi, s * ri + kh, 0, 0)))
            inputs.append(views[v])
    in_specs += [
        pl.BlockSpec((3, 3, c, cout), lambda bi, ri: (0, 0, 0, 0)),
        pl.BlockSpec((1, cout), lambda bi, ri: (0, 0)),
    ]
    inputs += [w_hwio, b]

    kernel = functools.partial(_conv3x3_bn_relu_kernel, n_views=n_views,
                               wo=wo, tap_view=tap_view, tap_col=tap_col)
    return pl.pallas_call(
        kernel,
        out_shape=jax.ShapeDtypeStruct((n, ho, wo, cout), out_dtype),
        grid_spec=pltpu.PrefetchScalarGridSpec(
            num_scalar_prefetch=0,
            grid=(n, ho),
            in_specs=in_specs,
            out_specs=pl.BlockSpec((1, 1, wo, cout),
                                   lambda bi, ri: (bi, ri, 0, 0)),
        ),
        compiler_params=pltpu.CompilerParams(
            dimension_semantics=("parallel", "parallel"),
            vmem_limit_bytes=_VMEM_LIMIT),
    )(*inputs)


# ------------------------------ module glue --------------------------------

def fold_bn(gamma, beta, mean, var, eps=1e-5):
    """Inference-mode BatchNorm -> per-channel (scale, bias)."""
    scale = gamma / jnp.sqrt(var + eps)
    bias = beta - mean * scale
    return scale, bias


class BottleneckPallas:
    """Deterministically-initialized Bottleneck block (eval-mode BN)."""
    expansion = 4

    def __init__(self, in_planes, planes, stride=1, key=None):
        if key is None:
            key = jax.random.PRNGKey(0)
        self.in_planes = in_planes
        self.planes = planes
        self.stride = stride
        out_planes = self.expansion * planes
        self.out_planes = out_planes
        keys = jax.random.split(key, 8)

        def conv_w(k, cout, cin, kh, kw):
            fan_in = cin * kh * kw
            return jax.random.normal(k, (cout, cin, kh, kw),
                                     jnp.float32) * (2.0 / fan_in) ** 0.5

        def bn_params(k, c):
            k1, k2, k3, k4 = jax.random.split(k, 4)
            gamma = 1.0 + 0.1 * jax.random.normal(k1, (c,), jnp.float32)
            beta = 0.1 * jax.random.normal(k2, (c,), jnp.float32)
            mean = 0.1 * jax.random.normal(k3, (c,), jnp.float32)
            var = 1.0 + 0.1 * jax.random.uniform(k4, (c,), jnp.float32)
            return gamma, beta, mean, var

        # Raw f32 parameters (PyTorch layouts) -- used by the pure-JAX reference.
        self.w1 = conv_w(keys[0], planes, in_planes, 1, 1)
        self.bn1 = bn_params(keys[1], planes)
        self.w2 = conv_w(keys[2], planes, planes, 3, 3)
        self.bn2 = bn_params(keys[3], planes)
        self.w3 = conv_w(keys[4], out_planes, planes, 1, 1)
        self.bn3 = bn_params(keys[5], out_planes)
        self.has_shortcut = (stride != 1) or (in_planes != out_planes)
        if self.has_shortcut:
            self.ws = conv_w(keys[6], out_planes, in_planes, 1, 1)
            self.bns = bn_params(keys[7], out_planes)

        # Folded, matmul-friendly bf16 weight slabs (BN scale folded into the
        # weight columns; biases kept in f32).  Done once at construction.
        s1, b1 = fold_bn(*self.bn1)
        self.w1_mat = (self.w1.reshape(planes, in_planes).T
                       * s1[None, :]).astype(jnp.bfloat16)
        self.b1 = b1.reshape(1, -1)

        s2, b2 = fold_bn(*self.bn2)
        self.w2_hwio = (jnp.transpose(self.w2, (2, 3, 1, 0))
                        * s2[None, None, None, :]).astype(jnp.bfloat16)
        self.b2 = b2.reshape(1, -1)

        s3, b3 = fold_bn(*self.bn3)
        self.w3_mat = (self.w3.reshape(out_planes, planes).T
                       * s3[None, :]).astype(jnp.bfloat16)
        self.b3 = b3.reshape(1, -1)

        if self.has_shortcut:
            ss, bs = fold_bn(*self.bns)
            self.ws_mat = (self.ws.reshape(out_planes, in_planes).T
                           * ss[None, :]).astype(jnp.bfloat16)
            # conv3-BN bias and shortcut-BN bias collapse into one vector.
            self.b3_total = (b3 + bs).reshape(1, -1)

    def forward_nhwc(self, x_nhwc):
        """NHWC bf16 forward. Use this inside a full NHWC model so the
        NCHW<->NHWC transposes at the block boundary disappear."""
        x = x_nhwc.astype(jnp.bfloat16)
        n, hgt, wid, cin = x.shape
        s = self.stride

        # conv1 (1x1) + bn1 + relu
        h1 = matmul_bias(x.reshape(n * hgt * wid, cin), self.w1_mat, self.b1,
                         relu=True)
        h1 = h1.reshape(n, hgt, wid, self.planes)

        # conv2 (3x3, stride, pad=1) + bn2 + relu -- fused, no im2col
        h2 = conv3x3_bn_relu(h1, self.w2_hwio, self.b2, s)
        _, ho, wo, _ = h2.shape
        h2 = h2.reshape(n * ho * wo, self.planes)

        # conv3 (1x1) + bn3 + shortcut + residual add + relu, one fused kernel
        if self.has_shortcut:
            x_sc = x if s == 1 else x[:, ::s, ::s, :]   # strided 1x1-conv pick
            x_sc = x_sc.reshape(n * ho * wo, cin)
            out = conv3_projection_fused(h2, self.w3_mat, x_sc, self.ws_mat,
                                         self.b3_total)
        else:
            out = conv3_identity_fused(h2, self.w3_mat, self.b3,
                                       x.reshape(n * hgt * wid, cin))
        return out.reshape(n, ho, wo, self.out_planes)

    def __call__(self, x_nchw):
        # PyTorch-style NCHW interface (transposes are XLA glue).
        # TODO(synk): in a full network keep activations NHWC (forward_nhwc)
        # to avoid these two extra HBM passes per block.
        x = jnp.transpose(x_nchw, (0, 2, 3, 1))
        out = self.forward_nhwc(x)
        return jnp.transpose(out, (0, 3, 1, 2))


# --------------------------- pure-JAX reference ----------------------------

def reference_forward(block: BottleneckPallas, x_nchw):
    x = jnp.transpose(x_nchw, (0, 2, 3, 1)).astype(jnp.float32)
    dn = lax.conv_dimension_numbers(x.shape, (1, 1, 1, 1),
                                    ("NHWC", "HWIO", "NHWC"))

    def conv(inp, w_oihw, stride, pad):
        w_hwio = jnp.transpose(w_oihw, (2, 3, 1, 0))
        return lax.conv_general_dilated(inp, w_hwio, (stride, stride),
                                        [(pad, pad), (pad, pad)],
                                        dimension_numbers=dn)

    def bn(inp, params):
        g, b, m, v = params
        return (inp - m) / jnp.sqrt(v + 1e-5) * g + b

    out = jax.nn.relu(bn(conv(x, block.w1, 1, 0), block.bn1))
    out = jax.nn.relu(bn(conv(out, block.w2, block.stride, 1), block.bn2))
    out = bn(conv(out, block.w3, 1, 0), block.bn3)
    if block.has_shortcut:
        sc = bn(conv(x, block.ws, block.stride, 0), block.bns)
    else:
        sc = x
    out = jax.nn.relu(out + sc)
    return jnp.transpose(out, (0, 3, 1, 2))


# --------------------------------- main ------------------------------------

if __name__ == "__main__":
    key = jax.random.PRNGKey(0)
    configs = [
        # (batch, in_planes, planes, spatial, stride)
        (2, 8, 4, 8, 1),    # projection shortcut (channel change), stride 1
        (2, 16, 4, 8, 1),   # identity shortcut
        (2, 8, 4, 8, 2),    # projection shortcut, stride 2
    ]
    for batch, cin, planes, spatial, stride in configs:
        kx, kp, key = jax.random.split(key, 3)
        x = jax.random.normal(kx, (batch, cin, spatial, spatial), jnp.float32)
        block = BottleneckPallas(cin, planes, stride=stride, key=kp)
        y = jax.block_until_ready(block(x))
        y_ref = jax.block_until_ready(reference_forward(block, x))
        # bf16 activations/weights -> loosened tolerance vs. the f32 reference.
        np.testing.assert_allclose(np.asarray(y.astype(jnp.float32)),
                                   np.asarray(y_ref), rtol=5e-2, atol=5e-2)
    print("KERNEL_OK")
</pallas_src>

<mosaic_0001>
module attributes {stable_mosaic.version = 11 : i64} {
  func.func @_mm_bias_kernel(%arg0: i32, %arg1: i32, %arg2: memref<128x8xbf16, #tpu.memory_space<vmem>>, %arg3: memref<8x4xbf16, #tpu.memory_space<vmem>>, %arg4: memref<1x4xf32, #tpu.memory_space<vmem>>, %arg5: memref<128x4xbf16, #tpu.memory_space<vmem>>, %arg6: memref<128x4xf32, #tpu.memory_space<vmem>>) attributes {dimension_semantics = [#tpu.dimension_semantics<parallel>, #tpu.dimension_semantics<arbitrary>], iteration_bounds = array<i64: 1, 1>, scalar_prefetch = 0 : i64, scratch_operands = 1 : i64, tpu.core_type = #tpu.core_type<tc>, window_params = [{transform_indices = @transform_0, window_bounds = array<i64: 128, 8>}, {transform_indices = @transform_1, window_bounds = array<i64: 8, 4>}, {pipeline_mode = #tpu.pipeline_mode<synchronous>, transform_indices = @transform_2, window_bounds = array<i64: 1, 4>}, {transform_indices = @transform_3, window_bounds = array<i64: 128, 4>}]} {
    %c0_i32 = arith.constant 0 : i32
    %0 = arith.cmpi eq, %arg1, %c0_i32 : i32
    %1 = arith.extui %0 : i1 to i32
    %c0_i32_0 = arith.constant 0 : i32
    %2 = arith.cmpi ne, %1, %c0_i32_0 : i32
    scf.if %2 {
      %cst_10 = arith.constant 0.000000e+00 : f32
      %12 = vector.broadcast %cst_10 : f32 to vector<128x4xf32>
      %c0_11 = arith.constant 0 : index
      %c0_12 = arith.constant 0 : index
      %13 = vector.load %arg6[%c0_11, %c0_12] : memref<128x4xf32, #tpu.memory_space<vmem>>, vector<128x4xf32>
      tpu.vector_store %arg6[%c0_11, %c0_12], %12 {strides = array<i32>} : memref<128x4xf32, #tpu.memory_space<vmem>>, vector<128x4xf32>,
    } else {
    }
    %c0 = arith.constant 0 : index
    %c0_1 = arith.constant 0 : index
    %3 = vector.load %arg6[%c0, %c0_1] : memref<128x4xf32, #tpu.memory_space<vmem>>, vector<128x4xf32>
    %c0_2 = arith.constant 0 : index
    %c0_3 = arith.constant 0 : index
    %4 = vector.load %arg2[%c0_2, %c0_3] : memref<128x8xbf16, #tpu.memory_space<vmem>>, vector<128x8xbf16>
    %c0_4 = arith.constant 0 : index
    %c0_5 = arith.constant 0 : index
    %5 = vector.load %arg3[%c0_4, %c0_5] : memref<8x4xbf16, #tpu.memory_space<vmem>>, vector<8x4xbf16>
    %cst = arith.constant dense<0.000000e+00> : vector<128x4xf32>
    %6 = tpu.matmul %4, %5, %cst {dimension_numbers = #tpu.dot_dimension_numbers<[1], [0], [0], [1], [0, 0, 1, 1], [], []>} : vector<128x8xbf16>, vector<8x4xbf16>, vector<128x4xf32> -> vector<128x4xf32>
    %7 = arith.addf %3, %6 : vector<128x4xf32>
    %c0_6 = arith.constant 0 : index
    %c0_7 = arith.constant 0 : index
    %8 = vector.load %arg6[%c0_6, %c0_7] : memref<128x4xf32, #tpu.memory_space<vmem>>, vector<128x4xf32>
    tpu.vector_store %arg6[%c0_6, %c0_7], %7 {strides = array<i32>} : memref<128x4xf32, #tpu.memory_space<vmem>>, vector<128x4xf32>,
    %c0_i32_8 = arith.constant 0 : i32
    %9 = arith.cmpi eq, %arg1, %c0_i32_8 : i32
    %10 = arith.extui %9 : i1 to i32
    %c0_i32_9 = arith.constant 0 : i32
    %11 = arith.cmpi ne, %10, %c0_i32_9 : i32
    scf.if %11 {
      %c0_10 = arith.constant 0 : index
      %c0_11 = arith.constant 0 : index
      %12 = vector.load %arg6[%c0_10, %c0_11] : memref<128x4xf32, #tpu.memory_space<vmem>>, vector<128x4xf32>
      %c0_12 = arith.constant 0 : index
      %c0_13 = arith.constant 0 : index
      %13 = vector.load %arg4[%c0_12, %c0_13] : memref<1x4xf32, #tpu.memory_space<vmem>>, vector<1x4xf32>
      %14 = vector.broadcast %13 : vector<1x4xf32> to vector<128x4xf32>
      %15 = arith.addf %12, %14 : vector<128x4xf32>
      %cst_14 = arith.constant 0.000000e+00 : f32
      %16 = vector.broadcast %cst_14 : f32 to vector<128x4xf32>
      %17 = arith.maximumf %15, %16 : vector<128x4xf32>
      %18 = arith.truncf %17 : vector<128x4xf32> to vector<128x4xbf16>
      %c0_15 = arith.constant 0 : index
      %c0_16 = arith.constant 0 : index
      %19 = vector.load %arg5[%c0_15, %c0_16] : memref<128x4xbf16, #tpu.memory_space<vmem>>, vector<128x4xbf16>
      tpu.vector_store %arg5[%c0_15, %c0_16], %18 {strides = array<i32>} : memref<128x4xbf16, #tpu.memory_space<vmem>>, vector<128x4xbf16>,
    } else {
    }
    return
  }
  func.func @transform_0(%arg0: i32, %arg1: i32) -> (i32, i32) {
    %c0_i32 = arith.constant 0 : i32
    return %arg0, %arg1 : i32, i32
  }
  func.func @transform_1(%arg0: i32, %arg1: i32) -> (i32, i32) {
    %c0_i32 = arith.constant 0 : i32
    %c0_i32_0 = arith.constant 0 : i32
    return %arg1, %c0_i32 : i32, i32
  }
  func.func @transform_2(%arg0: i32, %arg1: i32) -> (i32, i32) {
    %c0_i32 = arith.constant 0 : i32
    %c0_i32_0 = arith.constant 0 : i32
    %c0_i32_1 = arith.constant 0 : i32
    return %c0_i32, %c0_i32_0 : i32, i32
  }
  func.func @transform_3(%arg0: i32, %arg1: i32) -> (i32, i32) {
    %c0_i32 = arith.constant 0 : i32
    %c0_i32_0 = arith.constant 0 : i32
    return %arg0, %c0_i32 : i32, i32
  }
}

</mosaic_0001>

<bundles_post_ra>
// kernel: tpu_custom_call.1
= control target key start
LH: loop header
LB: loop body
LE: loop exit
PB: predicated region body
PF: predicated region fallthrough
CT: control target
= control target key end

     0   :  { %vm134_vm0 = vcmask 1043456   ;;  %vm109_vm1 = vcmask 64512   ;;  %vm19_vm2 = vcmask 31744   ;;  %v500_v1 = vmov 0.0   ;;  %s676_s1 = inlined_call_operand.vmem [shape: bf16[8,4], index: 1, kind: input, shape index: {}]   ;;  %s677_s0 = inlined_call_operand.vmem [shape: bf16[128,8], index: 0, kind: input, shape index: {}]   ;;  %s678_s2 = inlined_call_operand.vmem [shape: f32[1,4], index: 2, kind: input, shape index: {}]   ;;  %s679_s3 = inlined_call_operand.vmem [shape: bf16[128,4], index: 3, kind: output, shape index: {}]  }
   0x1   :  { %v68_v0 = vld [vmem:[%s676_s1] sm:$0xf]  ;;  %22 = vst.msk [vmem:[#allocation2 + $0x10] sm:$0xff] %vm19_vm2, %v500_v1  ;;  %20 = vst.msk [vmem:[#allocation2] sm:$0xff] %vm19_vm2, %v500_v1  ;;  %v494_v5 = vld [vmem:[%s677_s0 + $0x8] sm:$0xff]   ;;  %vm390_vm3 = vcmask 27648  }
   0x2   :  { %21 = vst.msk [vmem:[#allocation2 + $0x8] sm:$0xff] %vm19_vm2, %v500_v1  ;;  %23 = vst.msk [vmem:[#allocation2 + $0x18] sm:$0xff] %vm19_vm2, %v500_v1  ;;  %489 = vmatprep.subr.msk.bf16.mxu0 %vm134_vm0, %v68_v0  ;;  %490 = vmatprep.subr.msk.bf16.mxu1 %vm134_vm0, %v68_v0  ;;  %v136_v2 = vsel %vm134_vm0, %v68_v0, 0  ;;  %v492_v3 = vld [vmem:[%s677_s0] sm:$0xff]   ;;  %v495_v6 = vld [vmem:[%s677_s0 + $0x28] sm:$0xff]  }
   0x3   :  { %24 = vst.msk [vmem:[#allocation2 + $0x20] sm:$0xff] %vm19_vm2, %v500_v1  ;;  %25 = vst.msk [vmem:[#allocation2 + $0x28] sm:$0xff] %vm19_vm2, %v500_v1  ;;  %470 = vmatpush3.bf16.msra.mxu0 %v136_v2  ;;  %488 = vmatpush3.bf16.msra.mxu1 %v136_v2  ;;  %v493_v4 = vld [vmem:[%s677_s0 + $0x20] sm:$0xff]   ;;  %v496_v7 = vld [vmem:[%s677_s0 + $0x10] sm:$0xff]  }
   0x4   :  { %26 = vst.msk [vmem:[#allocation2 + $0x30] sm:$0xff] %vm19_vm2, %v500_v1  ;;  %27 = vst.msk [vmem:[#allocation2 + $0x38] sm:$0xff] %vm19_vm2, %v500_v1  ;;  %471 = vmatprep.mubr.msk.bf16.mxu0 %vm109_vm1, %v492_v3  ;;  %479 = vmatprep.mubr.msk.bf16.mxu1 %vm109_vm1, %v493_v4  ;;  %v497_v8 = vld [vmem:[%s677_s0 + $0x30] sm:$0xff]   ;;  %v498_v9 = vld [vmem:[%s677_s0 + $0x18] sm:$0xff]  }
   0x5   :  { %28 = vst.msk [vmem:[#allocation2 + $0x40] sm:$0xff] %vm19_vm2, %v500_v1  ;;  %29 = vst.msk [vmem:[#allocation2 + $0x48] sm:$0xff] %vm19_vm2, %v500_v1  ;;  %v499_v10 = vld [vmem:[%s677_s0 + $0x38] sm:$0xff]   ;;  %v586_v38 = vld [vmem:[%s678_s2] ss:$0 sm:$0xff] }
   0x6   :  { %30 = vst.msk [vmem:[#allocation2 + $0x50] sm:$0xff] %vm19_vm2, %v500_v1  ;;  %31 = vst.msk [vmem:[#allocation2 + $0x58] sm:$0xff] %vm19_vm2, %v500_v1  ;;  %472 = vmatmul.mubr.msk.bf16.vlgmr.msra.gmra.mrb[0].mxu0 %vm109_vm1, %v494_v5  ;;  %480 = vmatmul.mubr.msk.bf16.vlgmr.msra.gmra.mrb[0].mxu1 %vm109_vm1, %v495_v6 }
   0x7   :  { %32 = vst.msk [vmem:[#allocation2 + $0x60] sm:$0xff] %vm19_vm2, %v500_v1  ;;  %33 = vst.msk [vmem:[#allocation2 + $0x68] sm:$0xff] %vm19_vm2, %v500_v1  ;;  %475 = vmatprep.mubr.msk.bf16.mxu0 %vm109_vm1, %v496_v7  ;;  %483 = vmatprep.mubr.msk.bf16.mxu1 %vm109_vm1, %v497_v8 }
   0x8   :  { %34 = vst.msk [vmem:[#allocation2 + $0x70] sm:$0xff] %vm19_vm2, %v500_v1  ;;  %35 = vst.msk [vmem:[#allocation2 + $0x78] sm:$0xff] %vm19_vm2, %v500_v1  ;;  %v38_v11 = vld [vmem:[#allocation2 + $0x10] sm:$0xff]  ;;  %v36_v13 = vld [vmem:[#allocation2] sm:$0xff] }
   0x9   :  { %v39_v16 = vld [vmem:[#allocation2 + $0x18] sm:$0xff]  ;;  %v37_v21 = vld [vmem:[#allocation2 + $0x8] sm:$0xff] }
   0xa   :  { %v40_v37 = vld [vmem:[#allocation2 + $0x20] sm:$0xff]  ;;  %v41_v46 = vld [vmem:[#allocation2 + $0x28] sm:$0xff] }
   0xb   :  { %v42_v35 = vld [vmem:[#allocation2 + $0x30] sm:$0xff]  ;;  %v43_v41 = vld [vmem:[#allocation2 + $0x38] sm:$0xff] }
   0xc   :  { %v44_v15 = vld [vmem:[#allocation2 + $0x40] sm:$0xff]  ;;  %v45_v26 = vld [vmem:[#allocation2 + $0x48] sm:$0xff] }
   0xd   :  { %v46_v12 = vld [vmem:[#allocation2 + $0x50] sm:$0xff]  ;;  %v47_v20 = vld [vmem:[#allocation2 + $0x58] sm:$0xff] }
   0xe   :  { %476 = vmatmul.mubr.msk.bf16.gmra.mrb[4].mxu0 %vm109_vm1, %v498_v9  ;;  %484 = vmatmul.mubr.msk.bf16.gmra.mrb[4].mxu1 %vm109_vm1, %v499_v10  ;;  %v48_v40 = vld [vmem:[#allocation2 + $0x60] sm:$0xff]  ;;  %v49_v52 = vld [vmem:[#allocation2 + $0x68] sm:$0xff] }
   0xf   :  { %v50_v36 = vld [vmem:[#allocation2 + $0x70] sm:$0xff]  ;;  %v51_v45 = vld [vmem:[#allocation2 + $0x78] sm:$0xff] }
  0xd9   :  { %v473_v14 = vpop.f32.mrb[0].mxu0  ;;  %v481_v18 = vpop.f32.mrb[0].mxu1 }
  0xda   :  { %v237_v17 = vadd.f32 %v473_v14, %v38_v11  ;;  %v172_v19 = vpop.f32.mrb[1].mxu0  ;;  %v245_v22 = vadd.f32 %v481_v18, %v46_v12  ;;  %v204_v24 = vpop.f32.mrb[1].mxu1 }
  0xdb   :  { %v235_v23 = vadd.f32 %v172_v19, %v36_v13  ;;  %v474_v25 = vpop.f32.mrb[2].mxu0  ;;  %v243_v27 = vadd.f32 %v204_v24, %v44_v15  ;;  %v482_v29 = vpop.f32.mrb[2].mxu1 }
  0xdc   :  { %254 = vst.msk [vmem:[#allocation2 + $0x10] sm:$0xff] %vm19_vm2, %v237_v17  ;;  %v238_v28 = vadd.f32 %v474_v25, %v39_v16  ;;  %v175_v30 = vpop.f32.mrb[3].mxu0  ;;  %262 = vst.msk [vmem:[#allocation2 + $0x50] sm:$0xff] %vm19_vm2, %v245_v22  ;;  %v246_v31 = vadd.f32 %v482_v29, %v47_v20  ;;  %v207_v33 = vpop.f32.mrb[3].mxu1 }
  0xdd   :  { %252 = vst.msk [vmem:[#allocation2] sm:$0xff] %vm19_vm2, %v235_v23  ;;  %v236_v32 = vadd.f32 %v175_v30, %v37_v21  ;;  %260 = vst.msk [vmem:[#allocation2 + $0x40] sm:$0xff] %vm19_vm2, %v243_v27  ;;  %v244_v34 = vadd.f32 %v207_v33, %v45_v26 }
  0xde   :  { %255 = vst.msk [vmem:[#allocation2 + $0x18] sm:$0xff] %vm19_vm2, %v238_v28  ;;  %263 = vst.msk [vmem:[#allocation2 + $0x58] sm:$0xff] %vm19_vm2, %v246_v31 }
  0xdf   :  { %253 = vst.msk [vmem:[#allocation2 + $0x8] sm:$0xff] %vm19_vm2, %v236_v32  ;;  %261 = vst.msk [vmem:[#allocation2 + $0x48] sm:$0xff] %vm19_vm2, %v244_v34 }
  0xe1   :  { %v477_v39 = vpop.f32.mrb[4].mxu0  ;;  %v485_v43 = vpop.f32.mrb[4].mxu1 }
  0xe2   :  { %v241_v42 = vadd.f32 %v477_v39, %v42_v35  ;;  %v188_v44 = vpop.f32.mrb[5].mxu0  ;;  %v249_v48 = vadd.f32 %v485_v43, %v50_v36  ;;  %v220_v50 = vpop.f32.mrb[5].mxu1 }
  0xe3   :  { %v273_v47 = vld [vmem:[#allocation2 + $0x10] sm:$0xff]  ;;  %v239_v49 = vadd.f32 %v188_v44, %v40_v37  ;;  %v478_v51 = vpop.f32.mrb[6].mxu0  ;;  %v247_v56 = vadd.f32 %v220_v50, %v48_v40  ;;  %v486_v58 = vpop.f32.mrb[6].mxu1 }
  0xe4   :  { %v296_v53 = vadd.f32 %v586_v38, %v273_v47  ;;  %v281_v54 = vld [vmem:[#allocation2 + $0x50] sm:$0xff]  ;;  %v271_v55 = vld [vmem:[#allocation2] sm:$0xff]  ;;  %258 = vst.msk [vmem:[#allocation2 + $0x30] sm:$0xff] %vm19_vm2, %v241_v42  ;;  %v242_v57 = vadd.f32 %v478_v51, %v43_v41  ;;  %v191_v59 = vpop.f32.mrb[7].mxu0  ;;  %266 = vst.msk [vmem:[#allocation2 + $0x70] sm:$0xff] %vm19_vm2, %v249_v48  ;;  %v250_v0 = vadd.f32 %v486_v58, %v51_v45  ;;  %v223_v2 = vpop.f32.mrb[7].mxu1 }
  0xe5   :  { %v304_v60 = vadd.f32 %v586_v38, %v281_v54  ;;  %v294_v61 = vadd.f32 %v586_v38, %v271_v55  ;;  %v279_v62 = vld [vmem:[#allocation2 + $0x40] sm:$0xff]  ;;  %v274_v63 = vld [vmem:[#allocation2 + $0x18] sm:$0xff]  ;;  %256 = vst.msk [vmem:[#allocation2 + $0x20] sm:$0xff] %vm19_vm2, %v239_v49  ;;  %v240_v1 = vadd.f32 %v191_v59, %v41_v46  ;;  %264 = vst.msk [vmem:[#allocation2 + $0x60] sm:$0xff] %vm19_vm2, %v247_v56 }
  0xe6   :  { %v312_v3 = vmax.f32 %v296_v53, 0.0  ;;  %v302_v4 = vadd.f32 %v586_v38, %v279_v62  ;;  %v297_v5 = vadd.f32 %v586_v38, %v274_v63  ;;  %v282_v6 = vld [vmem:[#allocation2 + $0x58] sm:$0xff]  ;;  %v272_v7 = vld [vmem:[#allocation2 + $0x8] sm:$0xff]  ;;  %259 = vst.msk [vmem:[#allocation2 + $0x38] sm:$0xff] %vm19_vm2, %v242_v57  ;;  %v248_v8 = vadd.f32 %v223_v2, %v49_v52  ;;  %267 = vst.msk [vmem:[#allocation2 + $0x78] sm:$0xff] %vm19_vm2, %v250_v0 }
  0xe7   :  { %v320_v9 = vmax.f32 %v304_v60, 0.0  ;;  %v310_v10 = vmax.f32 %v294_v61, 0.0  ;;  %v305_v11 = vadd.f32 %v586_v38, %v282_v6  ;;  %v295_v12 = vadd.f32 %v586_v38, %v272_v7  ;;  %v280_v13 = vld [vmem:[#allocation2 + $0x48] sm:$0xff]  ;;  %257 = vst.msk [vmem:[#allocation2 + $0x28] sm:$0xff] %vm19_vm2, %v240_v1 }
  0xe8   :  { %v446_v14 = vpack.c.bf16 %v312_v3, %v312_v3  ;;  %v318_v15 = vmax.f32 %v302_v4, 0.0  ;;  %v313_v16 = vmax.f32 %v297_v5, 0.0  ;;  %v303_v17 = vadd.f32 %v586_v38, %v280_v13  ;;  %265 = vst.msk [vmem:[#allocation2 + $0x68] sm:$0xff] %vm19_vm2, %v248_v8 }
  0xe9   :  { %v454_v18 = vpack.c.bf16 %v320_v9, %v320_v9  ;;  %v444_v19 = vpack.c.bf16 %v310_v10, %v310_v10  ;;  %v321_v20 = vmax.f32 %v305_v11, 0.0  ;;  %v311_v21 = vmax.f32 %v295_v12, 0.0 }
  0xea   :  { %393 = vst.msk [vmem:[%s679_s3 + $0x8] sm:$0xf] %vm390_vm3, %v446_v14  ;;  %v452_v22 = vpack.c.bf16 %v318_v15, %v318_v15  ;;  %v447_v23 = vpack.c.bf16 %v313_v16, %v313_v16  ;;  %v319_v24 = vmax.f32 %v303_v17, 0.0 }
  0xeb   :  { %401 = vst.msk [vmem:[%s679_s3 + $0x28] sm:$0xf] %vm390_vm3, %v454_v18  ;;  %391 = vst.msk [vmem:[%s679_s3] sm:$0xf] %vm390_vm3, %v444_v19  ;;  %v455_v25 = vpack.c.bf16 %v321_v20, %v321_v20  ;;  %v445_v26 = vpack.c.bf16 %v311_v21, %v311_v21  ;;  %v277_v27 = vld [vmem:[#allocation2 + $0x30] sm:$0xff] }
  0xec   :  { %399 = vst.msk [vmem:[%s679_s3 + $0x20] sm:$0xf] %vm390_vm3, %v452_v22  ;;  %394 = vst.msk [vmem:[%s679_s3 + $0xc] sm:$0xf] %vm390_vm3, %v447_v23  ;;  %v453_v28 = vpack.c.bf16 %v319_v24, %v319_v24  ;;  %v300_v29 = vadd.f32 %v586_v38, %v277_v27  ;;  %v285_v30 = vld [vmem:[#allocation2 + $0x70] sm:$0xff]  ;;  %v275_v31 = vld [vmem:[#allocation2 + $0x20] sm:$0xff] }
  0xed   :  { %402 = vst.msk [vmem:[%s679_s3 + $0x2c] sm:$0xf] %vm390_vm3, %v455_v25  ;;  %392 = vst.msk [vmem:[%s679_s3 + $0x4] sm:$0xf] %vm390_vm3, %v445_v26  ;;  %v308_v32 = vadd.f32 %v586_v38, %v285_v30  ;;  %v298_v33 = vadd.f32 %v586_v38, %v275_v31  ;;  %v283_v34 = vld [vmem:[#allocation2 + $0x60] sm:$0xff]  ;;  %v278_v35 = vld [vmem:[#allocation2 + $0x38] sm:$0xff] }
  0xee   :  { %400 = vst.msk [vmem:[%s679_s3 + $0x24] sm:$0xf] %vm390_vm3, %v453_v28  ;;  %v316_v36 = vmax.f32 %v300_v29, 0.0  ;;  %v306_v37 = vadd.f32 %v586_v38, %v283_v34  ;;  %v301_v39 = vadd.f32 %v586_v38, %v278_v35  ;;  %v286_v40 = vld [vmem:[#allocation2 + $0x78] sm:$0xff]  ;;  %v276_v41 = vld [vmem:[#allocation2 + $0x28] sm:$0xff] }
  0xef   :  { %v324_v42 = vmax.f32 %v308_v32, 0.0  ;;  %v314_v43 = vmax.f32 %v298_v33, 0.0  ;;  %v309_v44 = vadd.f32 %v586_v38, %v286_v40  ;;  %v299_v45 = vadd.f32 %v586_v38, %v276_v41  ;;  %v284_v46 = vld [vmem:[#allocation2 + $0x68] sm:$0xff] }
  0xf0   :  { %v450_v47 = vpack.c.bf16 %v316_v36, %v316_v36  ;;  %v322_v48 = vmax.f32 %v306_v37, 0.0  ;;  %v317_v49 = vmax.f32 %v301_v39, 0.0  ;;  %v307_v50 = vadd.f32 %v586_v38, %v284_v46 }
  0xf1   :  { %v458_v51 = vpack.c.bf16 %v324_v42, %v324_v42  ;;  %v448_v52 = vpack.c.bf16 %v314_v43, %v314_v43  ;;  %v325_v53 = vmax.f32 %v309_v44, 0.0  ;;  %v315_v54 = vmax.f32 %v299_v45, 0.0 }
  0xf2   :  { %397 = vst.msk [vmem:[%s679_s3 + $0x18] sm:$0xf] %vm390_vm3, %v450_v47  ;;  %v456_v55 = vpack.c.bf16 %v322_v48, %v322_v48  ;;  %v451_v56 = vpack.c.bf16 %v317_v49, %v317_v49  ;;  %v323_v57 = vmax.f32 %v307_v50, 0.0 }
  0xf3   :  { %405 = vst.msk [vmem:[%s679_s3 + $0x38] sm:$0xf] %vm390_vm3, %v458_v51  ;;  %395 = vst.msk [vmem:[%s679_s3 + $0x10] sm:$0xf] %vm390_vm3, %v448_v52  ;;  %v459_v38 = vpack.c.bf16 %v325_v53, %v325_v53  ;;  %v449_v58 = vpack.c.bf16 %v315_v54, %v315_v54 }
  0xf4   :  { %403 = vst.msk [vmem:[%s679_s3 + $0x30] sm:$0xf] %vm390_vm3, %v456_v55  ;;  %398 = vst.msk [vmem:[%s679_s3 + $0x1c] sm:$0xf] %vm390_vm3, %v451_v56  ;;  %v457_v59 = vpack.c.bf16 %v323_v57, %v323_v57 }
  0xf5   :  { %406 = vst.msk [vmem:[%s679_s3 + $0x3c] sm:$0xf] %vm390_vm3, %v459_v38  ;;  %396 = vst.msk [vmem:[%s679_s3 + $0x14] sm:$0xf] %vm390_vm3, %v449_v58 }
  0xf6   :  { %404 = vst.msk [vmem:[%s679_s3 + $0x34] sm:$0xf] %vm390_vm3, %v457_v59 }

</bundles_post_ra>
